<compile_context>
chip_gen: v7x
topology: tpu7x:2x2x1
jax: 0.10.0
libtpu: 0.0.40
codegen_flags: <defaults>
</compile_context>

<pallas_src>
import numpy as np
import jax
import jax.numpy as jnp
from jax.experimental import pallas as pl
from jax.experimental.pallas import tpu as pltpu

DYNAMIC_THRESHOLDING_MIMIC_SCALE = 7.5
DYNAMIC_THRESHOLDING_PERCENTILE = 0.9995


# --------------------------------------------------------------------------
# Fused kernel: synthetic inner model + CFG weighting + (folded) dynamic
# thresholding + per-sample delta sum.  One grid step covers Bt samples.
#
# Synthetic inner model (stands in for the opaque `self.inner_model`):
#   out[b] = (W_ch @ x[b]) / (sigma[b]^2 + 1) + (proj @ mean_t(cond_emb[b]))[:, None] * x[b]
# --------------------------------------------------------------------------
def _fused_cfg_kernel(x_ref, u_emb_ref, c_emb_ref, wch_ref, proj_ref,
                      sig_ref, a_ref, b_ref, out_ref):
    i = pl.program_id(0)
    Bt, C, _HW = x_ref.shape
    maxc = c_emb_ref.shape[1]

    w = wch_ref[...]                                   # (C, C)
    proj = proj_ref[...]                               # (C, E)

    def cond_gain(emb_te):                             # emb_te: (T, E)
        m = jnp.mean(emb_te, axis=0, keepdims=True)    # (1, E)  sublane reduce
        return jnp.sum(proj * m, axis=1, keepdims=True)  # (C, 1) lane reduce (no MXU)

    # TODO(synk): per-sample (C, HW) slices fill only C of 8 sublanes; a (Bt*C, HW)
    # repack would raise VPU occupancy, but the kernel is HBM-bound after the collapse.
    for s in range(Bt):
        x = x_ref[s]                                   # (C, HW)  this sample's latent
        sidx = i * Bt + s

        # inner model, channel mix: K = C broadcast-FMAs on the VPU (tiny -> keep off MXU)
        y = w[:, 0:1] * x[0:1, :]
        for k in range(1, C):
            y = y + w[:, k:k + 1] * x[k:k + 1, :]
        sg = sig_ref[sidx]                             # scalar sigma from SMEM
        inv = 1.0 / (sg * sg + 1.0)                    # scalar reciprocal, broadcast below

        gain_u = cond_gain(u_emb_ref[s])               # (C, 1) uncond gain

        # Collapsed CFG + folded dynamic thresholding:
        #   delta_j   = (gain_c_j - gain_u) * x
        #   contrib_j = (delta_j - mean(delta_j)) * a_j + mean(delta_j) * b_j
        #   sum_j contrib_j = A*(x - xmean) + B*xmean
        # Padded cond slots carry a = b = 0 => exactly zero contribution.
        A = jnp.zeros((C, 1), jnp.float32)
        B = jnp.zeros((C, 1), jnp.float32)
        for j in range(maxc):
            g = cond_gain(c_emb_ref[s, j]) - gain_u    # (C, 1)
            A = A + g * a_ref[sidx * maxc + j]
            B = B + g * b_ref[sidx * maxc + j]

        xmean = jnp.mean(x, axis=-1, keepdims=True)    # (C, 1) per-channel spatial mean
        # denoised = shared + gain_u*x + A*(x - xmean) + B*xmean
        out_ref[s] = y * inv + (gain_u + A) * x + xmean * (B - A)


def _pick_sample_block(n, C, HW):
    """Samples per grid step: largest divisor of n whose f32 block fits ~4 MiB,
    preferring a >=2-step grid (v7x megacore) once Bt*C fills the 8 sublanes."""
    budget = 4 * 1024 * 1024
    divs = [d for d in range(1, n + 1)
            if n % d == 0 and d * C * HW * 4 <= budget]
    if not divs:
        return 1
    best = divs[-1]
    filled_two_step = [d for d in divs if d * C >= 8 and n // d >= 2]
    if filled_two_step:
        best = filled_two_step[-1]
    return best


@jax.jit
def _denoise_impl(x, sigma, uncond, cond, gather_idx, a_coef, b_coef, w_ch, proj):
    n, C, H, W = x.shape
    HW = H * W
    T, E = uncond.shape[1], uncond.shape[2]
    maxc = gather_idx.shape[1]

    x_f = x.astype(jnp.float32).reshape(n, C, HW)
    uncond_te = uncond.astype(jnp.float32)
    # regroup conds per sample, padded to max(counts); padded slots get a = b = 0
    cond_pad_te = cond.astype(jnp.float32)[gather_idx.reshape(-1)].reshape(n, maxc, T, E)

    Bt = _pick_sample_block(n, C, HW)
    out = pl.pallas_call(
        _fused_cfg_kernel,
        out_shape=jax.ShapeDtypeStruct((n, C, HW), jnp.float32),
        grid=(n // Bt,),
        in_specs=[
            pl.BlockSpec((Bt, C, HW), lambda i: (i, 0, 0)),
            pl.BlockSpec((Bt, T, E), lambda i: (i, 0, 0)),
            pl.BlockSpec((Bt, maxc, T, E), lambda i: (i, 0, 0, 0)),
            pl.BlockSpec((C, C), lambda i: (0, 0)),
            pl.BlockSpec((C, E), lambda i: (0, 0)),
            pl.BlockSpec(memory_space=pltpu.MemorySpace.SMEM),   # sigma   (n,)
            pl.BlockSpec(memory_space=pltpu.MemorySpace.SMEM),   # a_coef  (n*maxc,)
            pl.BlockSpec(memory_space=pltpu.MemorySpace.SMEM),   # b_coef  (n*maxc,)
        ],
        out_specs=pl.BlockSpec((Bt, C, HW), lambda i: (i, 0, 0)),
        compiler_params=pltpu.CompilerParams(
            dimension_semantics=("parallel",)),   # independent sample blocks
    )(x_f, uncond_te, cond_pad_te, w_ch, proj, sigma, a_coef, b_coef)
    return out.reshape(n, C, H, W)


# --------------------------------------------------------------------------
# Wrapper mirroring KCFGDenoiser.forward (tensor-cond path)
# --------------------------------------------------------------------------
class KCFGDenoiserPallas:
    def __init__(self, w_ch, proj, scale_factor):
        self.w_ch = jnp.asarray(w_ch, jnp.float32)      # (C, C) synthetic channel mixer
        self.proj = jnp.asarray(proj, jnp.float32)      # (C, E) synthetic cond projection
        self.scale_factor = float(scale_factor)         # cancels exactly in the folded form
        self._prep_cache = {}

    def _prep(self, counts, weights, cond_scale, dynamic_threshold):
        """Host-side prep cached per static CFG config (called once per sampling run)."""
        key = (counts, weights, float(cond_scale), bool(dynamic_threshold))
        hit = self._prep_cache.get(key)
        if hit is not None:
            return hit
        n = len(counts)
        maxc = max(counts) if counts else 0
        maxc = max(maxc, 1)                              # guard all-zero counts
        gather = np.zeros((n, maxc), np.int32)
        a_np = np.zeros(n * maxc, np.float32)
        b_np = np.zeros(n * maxc, np.float32)
        # Fold cond_scale / mimic scale / dynamic thresholding into two scalars per cond:
        #   contrib = (delta - mean(delta)) * a + mean(delta) * b
        #   dynamic_threshold: a = w * |wm| / max(|w|, |wm|),  b = w   (quantiles and
        #   scale_factor cancel exactly);  plain CFG: a = b = w.
        max_w = max(weights) if weights else 1.0
        off = 0
        for si, cnt in enumerate(counts):
            for j in range(cnt):
                gather[si, j] = off + j
                wj = float(weights[off + j]) * float(cond_scale)
                if dynamic_threshold:
                    wmj = (float(weights[off + j]) / max_w
                           * DYNAMIC_THRESHOLDING_MIMIC_SCALE)
                    denom = max(abs(wj), abs(wmj))
                    aj = wj * abs(wmj) / denom if denom > 0.0 else 0.0
                else:
                    aj = wj
                a_np[si * maxc + j] = aj
                b_np[si * maxc + j] = wj
            off += cnt
        entry = (jnp.asarray(gather), jnp.asarray(a_np), jnp.asarray(b_np))
        self._prep_cache[key] = entry
        return entry

    def __call__(self, x, sigma, uncond, cond, cond_scale, cond_counts,
                 cond_weights, dynamic_threshold=True, mask=None, x_frozen=None):
        counts = tuple(int(c) for c in cond_counts)
        weights = tuple(float(w) for w in cond_weights)
        cond_count = sum(counts)
        n_samples, C, H, W = x.shape
        assert len(counts) == n_samples == uncond.shape[0]
        assert cond.shape[0] == cond_count == len(weights)
        assert (H * W) % 128 == 0, "H*W must be a multiple of 128 for lane-dense stores"

        gather_idx, a_coef, b_coef = self._prep(counts, weights, cond_scale,
                                                dynamic_threshold)
        cond_arr = jnp.asarray(cond, jnp.float32)
        if cond_arr.shape[0] == 0:   # all counts zero: dummy cond row, a = b = 0 anyway
            cond_arr = jnp.zeros((1,) + tuple(uncond.shape[1:]), jnp.float32)

        denoised = _denoise_impl(
            jnp.asarray(x, jnp.float32),
            jnp.asarray(sigma, jnp.float32).reshape(n_samples),
            jnp.asarray(uncond, jnp.float32), cond_arr,
            gather_idx, a_coef, b_coef, self.w_ch, self.proj)

        if mask is not None:
            assert x_frozen is not None
            denoised = x_frozen * mask + denoised * (1.0 - mask)
        return denoised


# --------------------------------------------------------------------------
# Pure-JAX reference (mirrors the PyTorch code, full quantile path) for verification
# --------------------------------------------------------------------------
def reference_forward(x, sigma, uncond, cond, cond_scale, cond_counts,
                      cond_weights, scale_factor, w_ch, proj, dynamic_threshold=True):
    counts = np.asarray(cond_counts, dtype=np.int32)
    cond_count = int(counts.sum())
    n, C, H, W = x.shape
    x_in = jnp.concatenate([x, jnp.repeat(x, counts, axis=0)], axis=0)
    sigma_in = jnp.concatenate([sigma, jnp.repeat(sigma, counts, axis=0)], axis=0)
    cond_in = jnp.concatenate([uncond, cond], axis=0)                    # (B, T, E)
    B = x_in.shape[0]
    xf = x_in.reshape(B, C, H * W)
    y = jnp.einsum('ij,bjn->bin', w_ch, xf) / (sigma_in ** 2 + 1.0)[:, None, None]
    cmean = jnp.mean(cond_in, axis=1)                                    # (B, E)
    gain = cmean @ proj.T                                                # (B, C)
    out = (y + gain[:, :, None] * xf).reshape(B, C, H, W)

    uncond_out, conds_out = out[:n], out[n:]
    unconds = jnp.repeat(uncond_out, counts, axis=0)
    weights = (jnp.asarray(cond_weights, jnp.float32)
               * float(cond_scale)).reshape(-1, 1, 1, 1)
    deltas = conds_out - unconds
    if dynamic_threshold:
        max_w = max(cond_weights)
        wm = (jnp.asarray([w / max_w for w in cond_weights], jnp.float32)
              * DYNAMIC_THRESHOLDING_MIMIC_SCALE).reshape(-1, 1, 1, 1)
        deltas_target = deltas * weights
        deltas_mimic = deltas * wm
        dtf = (deltas_mimic / scale_factor).reshape(cond_count, C, H * W)
        dtm = dtf.mean(axis=2, keepdims=True)
        dt_q = jnp.quantile(jnp.abs(dtf - dtm), DYNAMIC_THRESHOLDING_PERCENTILE, axis=2)
        utf = (deltas_target / scale_factor).reshape(cond_count, C, H * W)
        utm = utf.mean(axis=2, keepdims=True)
        utc = utf - utm
        ut_q = jnp.quantile(jnp.abs(utc), DYNAMIC_THRESHOLDING_PERCENTILE, axis=2)
        ut_q = jnp.maximum(ut_q, dt_q)
        q_ratio = (ut_q / dt_q)[:, :, None]
        deltas = ((utc / q_ratio + utm).reshape(cond_count, C, H, W) * scale_factor)
    else:
        deltas = deltas * weights

    sidx = np.repeat(np.arange(n), counts)
    sums = jnp.zeros((n, C, H, W), jnp.float32).at[sidx].add(deltas)
    return uncond_out + sums


if __name__ == "__main__":
    key = jax.random.PRNGKey(0)
    kx, ks, ku, kc, kw1, kw2 = jax.random.split(key, 6)

    n_samples = 2
    C, H, W = 4, 16, 16
    T, E = 8, 32
    cond_counts = (2, 3)
    cond_count = sum(cond_counts)
    cond_weights = (1.0, 0.8, 0.5, 1.2, 0.7)
    cond_scale = 7.5
    scale_factor = 0.18215

    x = jax.random.normal(kx, (n_samples, C, H, W), dtype=jnp.float32)
    sigma = jax.random.uniform(ks, (n_samples,), dtype=jnp.float32,
                               minval=0.5, maxval=3.0)
    uncond = jax.random.normal(ku, (n_samples, T, E), dtype=jnp.float32)
    cond = jax.random.normal(kc, (cond_count, T, E), dtype=jnp.float32)

    # deterministic synthetic inner-model parameters
    w_ch = jax.random.normal(kw1, (C, C), dtype=jnp.float32) * 0.5
    proj = jax.random.normal(kw2, (C, E), dtype=jnp.float32) * 0.1

    model = KCFGDenoiserPallas(w_ch, proj, scale_factor)

    # dynamic thresholding path
    denoised = jax.block_until_ready(
        model(x, sigma, uncond, cond, cond_scale, cond_counts, cond_weights,
              dynamic_threshold=True))
    ref = jax.block_until_ready(
        reference_forward(x, sigma, uncond, cond, cond_scale, cond_counts,
                          cond_weights, scale_factor, w_ch, proj, True))
    assert denoised.shape == (n_samples, C, H, W)
    assert np.all(np.isfinite(np.asarray(ref)))
    assert np.all(np.isfinite(np.asarray(denoised)))
    np.testing.assert_allclose(np.asarray(denoised), np.asarray(ref),
                               rtol=2e-3, atol=2e-3)

    # plain CFG path (a = b = w)
    den2 = jax.block_until_ready(
        model(x, sigma, uncond, cond, cond_scale, cond_counts, cond_weights,
              dynamic_threshold=False))
    ref2 = jax.block_until_ready(
        reference_forward(x, sigma, uncond, cond, cond_scale, cond_counts,
                          cond_weights, scale_factor, w_ch, proj, False))
    np.testing.assert_allclose(np.asarray(den2), np.asarray(ref2),
                               rtol=2e-3, atol=2e-3)

    # second call hits the host-prep cache and the jit cache (no retrace)
    _ = jax.block_until_ready(
        model(x, sigma, uncond, cond, cond_scale, cond_counts, cond_weights,
              dynamic_threshold=True))

    print("KERNEL_OK")
</pallas_src>

<mosaic_0001>
module attributes {stable_mosaic.version = 11 : i64} {
  func.func @_fused_cfg_kernel(%arg0: i32, %arg1: memref<2x4x256xf32, #tpu.memory_space<vmem>>, %arg2: memref<2x8x32xf32, #tpu.memory_space<vmem>>, %arg3: memref<2x3x8x32xf32, #tpu.memory_space<vmem>>, %arg4: memref<4x4xf32, #tpu.memory_space<vmem>>, %arg5: memref<4x32xf32, #tpu.memory_space<vmem>>, %arg6: memref<2xf32, #tpu.memory_space<smem>>, %arg7: memref<6xf32, #tpu.memory_space<smem>>, %arg8: memref<6xf32, #tpu.memory_space<smem>>, %arg9: memref<2x4x256xf32, #tpu.memory_space<vmem>>) attributes {dimension_semantics = [#tpu.dimension_semantics<parallel>], iteration_bounds = array<i64: 1>, scalar_prefetch = 0 : i64, scratch_operands = 0 : i64, tpu.core_type = #tpu.core_type<tc>, window_params = [{transform_indices = @transform_0, window_bounds = array<i64: 2, 4, 256>}, {transform_indices = @transform_1, window_bounds = array<i64: 2, 8, 32>}, {transform_indices = @transform_2, window_bounds = array<i64: 2, 3, 8, 32>}, {pipeline_mode = #tpu.pipeline_mode<synchronous>, transform_indices = @transform_3, window_bounds = array<i64: 4, 4>}, {pipeline_mode = #tpu.pipeline_mode<synchronous>, transform_indices = @transform_4, window_bounds = array<i64: 4, 32>}, {transform_indices = @transform_5, window_bounds = array<i64: 2>}, {transform_indices = @transform_6, window_bounds = array<i64: 6>}, {transform_indices = @transform_7, window_bounds = array<i64: 6>}, {transform_indices = @transform_8, window_bounds = array<i64: 2, 4, 256>}]} {
    %c0 = arith.constant 0 : index
    %c0_0 = arith.constant 0 : index
    %0 = vector.load %arg4[%c0, %c0_0] : memref<4x4xf32, #tpu.memory_space<vmem>>, vector<4x4xf32>
    %c0_1 = arith.constant 0 : index
    %c0_2 = arith.constant 0 : index
    %1 = vector.load %arg5[%c0_1, %c0_2] : memref<4x32xf32, #tpu.memory_space<vmem>>, vector<4x32xf32>
    %c0_3 = arith.constant 0 : index
    %c0_4 = arith.constant 0 : index
    %c0_5 = arith.constant 0 : index
    %2 = vector.load %arg1[%c0_3, %c0_4, %c0_5] : memref<2x4x256xf32, #tpu.memory_space<vmem>>, vector<1x4x256xf32>
    %3 = vector.shape_cast %2 : vector<1x4x256xf32> to vector<4x256xf32>
    %c2_i32 = arith.constant 2 : i32
    %4 = arith.muli %arg0, %c2_i32 : i32
    %c0_i32 = arith.constant 0 : i32
    %5 = arith.addi %4, %c0_i32 : i32
    %6 = vector.extract_strided_slice %0 {offsets = [0, 0], sizes = [4, 1], strides = [1, 1]} : vector<4x4xf32> to vector<4x1xf32>
    %7 = vector.extract_strided_slice %3 {offsets = [0, 0], sizes = [1, 256], strides = [1, 1]} : vector<4x256xf32> to vector<1x256xf32>
    %8 = vector.broadcast %6 : vector<4x1xf32> to vector<4x256xf32>
    %9 = vector.broadcast %7 : vector<1x256xf32> to vector<4x256xf32>
    %10 = arith.mulf %8, %9 : vector<4x256xf32>
    %11 = vector.extract_strided_slice %0 {offsets = [0, 1], sizes = [4, 1], strides = [1, 1]} : vector<4x4xf32> to vector<4x1xf32>
    %12 = vector.extract_strided_slice %3 {offsets = [1, 0], sizes = [1, 256], strides = [1, 1]} : vector<4x256xf32> to vector<1x256xf32>
    %13 = vector.broadcast %11 : vector<4x1xf32> to vector<4x256xf32>
    %14 = vector.broadcast %12 : vector<1x256xf32> to vector<4x256xf32>
    %15 = arith.mulf %13, %14 : vector<4x256xf32>
    %16 = arith.addf %10, %15 : vector<4x256xf32>
    %17 = vector.extract_strided_slice %0 {offsets = [0, 2], sizes = [4, 1], strides = [1, 1]} : vector<4x4xf32> to vector<4x1xf32>
    %18 = vector.extract_strided_slice %3 {offsets = [2, 0], sizes = [1, 256], strides = [1, 1]} : vector<4x256xf32> to vector<1x256xf32>
    %19 = vector.broadcast %17 : vector<4x1xf32> to vector<4x256xf32>
    %20 = vector.broadcast %18 : vector<1x256xf32> to vector<4x256xf32>
    %21 = arith.mulf %19, %20 : vector<4x256xf32>
    %22 = arith.addf %16, %21 : vector<4x256xf32>
    %23 = vector.extract_strided_slice %0 {offsets = [0, 3], sizes = [4, 1], strides = [1, 1]} : vector<4x4xf32> to vector<4x1xf32>
    %24 = vector.extract_strided_slice %3 {offsets = [3, 0], sizes = [1, 256], strides = [1, 1]} : vector<4x256xf32> to vector<1x256xf32>
    %25 = vector.broadcast %23 : vector<4x1xf32> to vector<4x256xf32>
    %26 = vector.broadcast %24 : vector<1x256xf32> to vector<4x256xf32>
    %27 = arith.mulf %25, %26 : vector<4x256xf32>
    %28 = arith.addf %22, %27 : vector<4x256xf32>
    %29 = arith.index_cast %5 : i32 to index
    %30 = memref.load %arg6[%29] : memref<2xf32, #tpu.memory_space<smem>>
    %31 = arith.mulf %30, %30 : f32
    %cst = arith.constant 1.000000e+00 : f32
    %32 = arith.addf %31, %cst : f32
    %cst_6 = arith.constant 1.000000e+00 : f32
    %33 = arith.divf %cst_6, %32 : f32
    %c0_7 = arith.constant 0 : index
    %c0_8 = arith.constant 0 : index
    %c0_9 = arith.constant 0 : index
    %34 = vector.load %arg2[%c0_7, %c0_8, %c0_9] : memref<2x8x32xf32, #tpu.memory_space<vmem>>, vector<1x8x32xf32>
    %35 = vector.shape_cast %34 : vector<1x8x32xf32> to vector<8x32xf32>
    %cst_10 = arith.constant dense<0.000000e+00> : vector<32xf32>
    %36 = vector.multi_reduction <add>, %35, %cst_10 [0] : vector<8x32xf32> to vector<32xf32>
    %37 = vector.shape_cast %36 : vector<32xf32> to vector<1x32xf32>
    %cst_11 = arith.constant 8.000000e+00 : f32
    %38 = vector.broadcast %cst_11 : f32 to vector<1x32xf32>
    %39 = arith.divf %37, %38 : vector<1x32xf32>
    %40 = vector.broadcast %39 : vector<1x32xf32> to vector<4x32xf32>
    %41 = arith.mulf %1, %40 : vector<4x32xf32>
    %cst_12 = arith.constant dense<0.000000e+00> : vector<4xf32>
    %42 = vector.multi_reduction <add>, %41, %cst_12 [1] : vector<4x32xf32> to vector<4xf32>
    %43 = vector.shape_cast %42 : vector<4xf32> to vector<4x1xf32>
    %cst_13 = arith.constant 0.000000e+00 : f32
    %44 = vector.broadcast %cst_13 : f32 to vector<4x1xf32>
    %cst_14 = arith.constant 0.000000e+00 : f32
    %45 = vector.broadcast %cst_14 : f32 to vector<4x1xf32>
    %c0_15 = arith.constant 0 : index
    %c0_16 = arith.constant 0 : index
    %c0_17 = arith.constant 0 : index
    %c0_18 = arith.constant 0 : index
    %46 = vector.load %arg3[%c0_15, %c0_16, %c0_17, %c0_18] : memref<2x3x8x32xf32, #tpu.memory_space<vmem>>, vector<1x1x8x32xf32>
    %47 = vector.shape_cast %46 : vector<1x1x8x32xf32> to vector<8x32xf32>
    %cst_19 = arith.constant dense<0.000000e+00> : vector<32xf32>
    %48 = vector.multi_reduction <add>, %47, %cst_19 [0] : vector<8x32xf32> to vector<32xf32>
    %49 = vector.shape_cast %48 : vector<32xf32> to vector<1x32xf32>
    %cst_20 = arith.constant 8.000000e+00 : f32
    %50 = vector.broadcast %cst_20 : f32 to vector<1x32xf32>
    %51 = arith.divf %49, %50 : vector<1x32xf32>
    %52 = vector.broadcast %51 : vector<1x32xf32> to vector<4x32xf32>
    %53 = arith.mulf %1, %52 : vector<4x32xf32>
    %cst_21 = arith.constant dense<0.000000e+00> : vector<4xf32>
    %54 = vector.multi_reduction <add>, %53, %cst_21 [1] : vector<4x32xf32> to vector<4xf32>
    %55 = vector.shape_cast %54 : vector<4xf32> to vector<4x1xf32>
    %56 = arith.subf %55, %43 : vector<4x1xf32>
    %c3_i32 = arith.constant 3 : i32
    %57 = arith.muli %5, %c3_i32 : i32
    %c0_i32_22 = arith.constant 0 : i32
    %58 = arith.addi %57, %c0_i32_22 : i32
    %59 = arith.index_cast %58 : i32 to index
    %60 = memref.load %arg7[%59] : memref<6xf32, #tpu.memory_space<smem>>
    %61 = vector.broadcast %60 : f32 to vector<4x1xf32>
    %62 = arith.mulf %56, %61 : vector<4x1xf32>
    %63 = arith.addf %44, %62 : vector<4x1xf32>
    %c3_i32_23 = arith.constant 3 : i32
    %64 = arith.muli %5, %c3_i32_23 : i32
    %c0_i32_24 = arith.constant 0 : i32
    %65 = arith.addi %64, %c0_i32_24 : i32
    %66 = arith.index_cast %65 : i32 to index
    %67 = memref.load %arg8[%66] : memref<6xf32, #tpu.memory_space<smem>>
    %68 = vector.broadcast %67 : f32 to vector<4x1xf32>
    %69 = arith.mulf %56, %68 : vector<4x1xf32>
    %70 = arith.addf %45, %69 : vector<4x1xf32>
    %c0_25 = arith.constant 0 : index
    %c1 = arith.constant 1 : index
    %c0_26 = arith.constant 0 : index
    %c0_27 = arith.constant 0 : index
    %71 = vector.load %arg3[%c0_25, %c1, %c0_26, %c0_27] : memref<2x3x8x32xf32, #tpu.memory_space<vmem>>, vector<1x1x8x32xf32>
    %72 = vector.shape_cast %71 : vector<1x1x8x32xf32> to vector<8x32xf32>
    %cst_28 = arith.constant dense<0.000000e+00> : vector<32xf32>
    %73 = vector.multi_reduction <add>, %72, %cst_28 [0] : vector<8x32xf32> to vector<32xf32>
    %74 = vector.shape_cast %73 : vector<32xf32> to vector<1x32xf32>
    %cst_29 = arith.constant 8.000000e+00 : f32
    %75 = vector.broadcast %cst_29 : f32 to vector<1x32xf32>
    %76 = arith.divf %74, %75 : vector<1x32xf32>
    %77 = vector.broadcast %76 : vector<1x32xf32> to vector<4x32xf32>
    %78 = arith.mulf %1, %77 : vector<4x32xf32>
    %cst_30 = arith.constant dense<0.000000e+00> : vector<4xf32>
    %79 = vector.multi_reduction <add>, %78, %cst_30 [1] : vector<4x32xf32> to vector<4xf32>
    %80 = vector.shape_cast %79 : vector<4xf32> to vector<4x1xf32>
    %81 = arith.subf %80, %43 : vector<4x1xf32>
    %c3_i32_31 = arith.constant 3 : i32
    %82 = arith.muli %5, %c3_i32_31 : i32
    %c1_i32 = arith.constant 1 : i32
    %83 = arith.addi %82, %c1_i32 : i32
    %84 = arith.index_cast %83 : i32 to index
    %85 = memref.load %arg7[%84] : memref<6xf32, #tpu.memory_space<smem>>
    %86 = vector.broadcast %85 : f32 to vector<4x1xf32>
    %87 = arith.mulf %81, %86 : vector<4x1xf32>
    %88 = arith.addf %63, %87 : vector<4x1xf32>
    %c3_i32_32 = arith.constant 3 : i32
    %89 = arith.muli %5, %c3_i32_32 : i32
    %c1_i32_33 = arith.constant 1 : i32
    %90 = arith.addi %89, %c1_i32_33 : i32
    %91 = arith.index_cast %90 : i32 to index
    %92 = memref.load %arg8[%91] : memref<6xf32, #tpu.memory_space<smem>>
    %93 = vector.broadcast %92 : f32 to vector<4x1xf32>
    %94 = arith.mulf %81, %93 : vector<4x1xf32>
    %95 = arith.addf %70, %94 : vector<4x1xf32>
    %c0_34 = arith.constant 0 : index
    %c2 = arith.constant 2 : index
    %c0_35 = arith.constant 0 : index
    %c0_36 = arith.constant 0 : index
    %96 = vector.load %arg3[%c0_34, %c2, %c0_35, %c0_36] : memref<2x3x8x32xf32, #tpu.memory_space<vmem>>, vector<1x1x8x32xf32>
    %97 = vector.shape_cast %96 : vector<1x1x8x32xf32> to vector<8x32xf32>
    %cst_37 = arith.constant dense<0.000000e+00> : vector<32xf32>
    %98 = vector.multi_reduction <add>, %97, %cst_37 [0] : vector<8x32xf32> to vector<32xf32>
    %99 = vector.shape_cast %98 : vector<32xf32> to vector<1x32xf32>
    %cst_38 = arith.constant 8.000000e+00 : f32
    %100 = vector.broadcast %cst_38 : f32 to vector<1x32xf32>
    %101 = arith.divf %99, %100 : vector<1x32xf32>
    %102 = vector.broadcast %101 : vector<1x32xf32> to vector<4x32xf32>
    %103 = arith.mulf %1, %102 : vector<4x32xf32>
    %cst_39 = arith.constant dense<0.000000e+00> : vector<4xf32>
    %104 = vector.multi_reduction <add>, %103, %cst_39 [1] : vector<4x32xf32> to vector<4xf32>
    %105 = vector.shape_cast %104 : vector<4xf32> to vector<4x1xf32>
    %106 = arith.subf %105, %43 : vector<4x1xf32>
    %c3_i32_40 = arith.constant 3 : i32
    %107 = arith.muli %5, %c3_i32_40 : i32
    %c2_i32_41 = arith.constant 2 : i32
    %108 = arith.addi %107, %c2_i32_41 : i32
    %109 = arith.index_cast %108 : i32 to index
    %110 = memref.load %arg7[%109] : memref<6xf32, #tpu.memory_space<smem>>
    %111 = vector.broadcast %110 : f32 to vector<4x1xf32>
    %112 = arith.mulf %106, %111 : vector<4x1xf32>
    %113 = arith.addf %88, %112 : vector<4x1xf32>
    %c3_i32_42 = arith.constant 3 : i32
    %114 = arith.muli %5, %c3_i32_42 : i32
    %c2_i32_43 = arith.constant 2 : i32
    %115 = arith.addi %114, %c2_i32_43 : i32
    %116 = arith.index_cast %115 : i32 to index
    %117 = memref.load %arg8[%116] : memref<6xf32, #tpu.memory_space<smem>>
    %118 = vector.broadcast %117 : f32 to vector<4x1xf32>
    %119 = arith.mulf %106, %118 : vector<4x1xf32>
    %120 = arith.addf %95, %119 : vector<4x1xf32>
    %cst_44 = arith.constant dense<0.000000e+00> : vector<4xf32>
    %121 = vector.multi_reduction <add>, %3, %cst_44 [1] : vector<4x256xf32> to vector<4xf32>
    %122 = vector.shape_cast %121 : vector<4xf32> to vector<4x1xf32>
    %cst_45 = arith.constant 2.560000e+02 : f32
    %123 = vector.broadcast %cst_45 : f32 to vector<4x1xf32>
    %124 = arith.divf %122, %123 : vector<4x1xf32>
    %125 = vector.broadcast %33 : f32 to vector<4x256xf32>
    %126 = arith.mulf %28, %125 : vector<4x256xf32>
    %127 = arith.addf %43, %113 : vector<4x1xf32>
    %128 = vector.broadcast %127 : vector<4x1xf32> to vector<4x256xf32>
    %129 = arith.mulf %128, %3 : vector<4x256xf32>
    %130 = arith.addf %126, %129 : vector<4x256xf32>
    %131 = arith.subf %120, %113 : vector<4x1xf32>
    %132 = arith.mulf %124, %131 : vector<4x1xf32>
    %133 = vector.broadcast %132 : vector<4x1xf32> to vector<4x256xf32>
    %134 = arith.addf %130, %133 : vector<4x256xf32>
    %c0_46 = arith.constant 0 : index
    %c0_47 = arith.constant 0 : index
    %c0_48 = arith.constant 0 : index
    %135 = vector.load %arg9[%c0_46, %c0_47, %c0_48] : memref<2x4x256xf32, #tpu.memory_space<vmem>>, vector<1x4x256xf32>
    %136 = vector.shape_cast %135 : vector<1x4x256xf32> to vector<4x256xf32>
    %137 = vector.shape_cast %134 : vector<4x256xf32> to vector<1x4x256xf32>
    tpu.vector_store %arg9[%c0_46, %c0_47, %c0_48], %137 {strides = array<i32>} : memref<2x4x256xf32, #tpu.memory_space<vmem>>, vector<1x4x256xf32>,
    %c1_49 = arith.constant 1 : index
    %c0_50 = arith.constant 0 : index
    %c0_51 = arith.constant 0 : index
    %138 = vector.load %arg1[%c1_49, %c0_50, %c0_51] : memref<2x4x256xf32, #tpu.memory_space<vmem>>, vector<1x4x256xf32>
    %139 = vector.shape_cast %138 : vector<1x4x256xf32> to vector<4x256xf32>
    %c2_i32_52 = arith.constant 2 : i32
    %140 = arith.muli %arg0, %c2_i32_52 : i32
    %c1_i32_53 = arith.constant 1 : i32
    %141 = arith.addi %140, %c1_i32_53 : i32
    %142 = vector.extract_strided_slice %0 {offsets = [0, 0], sizes = [4, 1], strides = [1, 1]} : vector<4x4xf32> to vector<4x1xf32>
    %143 = vector.extract_strided_slice %139 {offsets = [0, 0], sizes = [1, 256], strides = [1, 1]} : vector<4x256xf32> to vector<1x256xf32>
    %144 = vector.broadcast %142 : vector<4x1xf32> to vector<4x256xf32>
    %145 = vector.broadcast %143 : vector<1x256xf32> to vector<4x256xf32>
    %146 = arith.mulf %144, %145 : vector<4x256xf32>
    %147 = vector.extract_strided_slice %0 {offsets = [0, 1], sizes = [4, 1], strides = [1, 1]} : vector<4x4xf32> to vector<4x1xf32>
    %148 = vector.extract_strided_slice %139 {offsets = [1, 0], sizes = [1, 256], strides = [1, 1]} : vector<4x256xf32> to vector<1x256xf32>
    %149 = vector.broadcast %147 : vector<4x1xf32> to vector<4x256xf32>
    %150 = vector.broadcast %148 : vector<1x256xf32> to vector<4x256xf32>
    %151 = arith.mulf %149, %150 : vector<4x256xf32>
    %152 = arith.addf %146, %151 : vector<4x256xf32>
    %153 = vector.extract_strided_slice %0 {offsets = [0, 2], sizes = [4, 1], strides = [1, 1]} : vector<4x4xf32> to vector<4x1xf32>
    %154 = vector.extract_strided_slice %139 {offsets = [2, 0], sizes = [1, 256], strides = [1, 1]} : vector<4x256xf32> to vector<1x256xf32>
    %155 = vector.broadcast %153 : vector<4x1xf32> to vector<4x256xf32>
    %156 = vector.broadcast %154 : vector<1x256xf32> to vector<4x256xf32>
    %157 = arith.mulf %155, %156 : vector<4x256xf32>
    %158 = arith.addf %152, %157 : vector<4x256xf32>
    %159 = vector.extract_strided_slice %0 {offsets = [0, 3], sizes = [4, 1], strides = [1, 1]} : vector<4x4xf32> to vector<4x1xf32>
    %160 = vector.extract_strided_slice %139 {offsets = [3, 0], sizes = [1, 256], strides = [1, 1]} : vector<4x256xf32> to vector<1x256xf32>
    %161 = vector.broadcast %159 : vector<4x1xf32> to vector<4x256xf32>
    %162 = vector.broadcast %160 : vector<1x256xf32> to vector<4x256xf32>
    %163 = arith.mulf %161, %162 : vector<4x256xf32>
    %164 = arith.addf %158, %163 : vector<4x256xf32>
    %165 = arith.index_cast %141 : i32 to index
    %166 = memref.load %arg6[%165] : memref<2xf32, #tpu.memory_space<smem>>
    %167 = arith.mulf %166, %166 : f32
    %cst_54 = arith.constant 1.000000e+00 : f32
    %168 = arith.addf %167, %cst_54 : f32
    %cst_55 = arith.constant 1.000000e+00 : f32
    %169 = arith.divf %cst_55, %168 : f32
    %c1_56 = arith.constant 1 : index
    %c0_57 = arith.constant 0 : index
    %c0_58 = arith.constant 0 : index
    %170 = vector.load %arg2[%c1_56, %c0_57, %c0_58] : memref<2x8x32xf32, #tpu.memory_space<vmem>>, vector<1x8x32xf32>
    %171 = vector.shape_cast %170 : vector<1x8x32xf32> to vector<8x32xf32>
    %cst_59 = arith.constant dense<0.000000e+00> : vector<32xf32>
    %172 = vector.multi_reduction <add>, %171, %cst_59 [0] : vector<8x32xf32> to vector<32xf32>
    %173 = vector.shape_cast %172 : vector<32xf32> to vector<1x32xf32>
    %cst_60 = arith.constant 8.000000e+00 : f32
    %174 = vector.broadcast %cst_60 : f32 to vector<1x32xf32>
    %175 = arith.divf %173, %174 : vector<1x32xf32>
    %176 = vector.broadcast %175 : vector<1x32xf32> to vector<4x32xf32>
    %177 = arith.mulf %1, %176 : vector<4x32xf32>
    %cst_61 = arith.constant dense<0.000000e+00> : vector<4xf32>
    %178 = vector.multi_reduction <add>, %177, %cst_61 [1] : vector<4x32xf32> to vector<4xf32>
    %179 = vector.shape_cast %178 : vector<4xf32> to vector<4x1xf32>
    %cst_62 = arith.constant 0.000000e+00 : f32
    %180 = vector.broadcast %cst_62 : f32 to vector<4x1xf32>
    %cst_63 = arith.constant 0.000000e+00 : f32
    %181 = vector.broadcast %cst_63 : f32 to vector<4x1xf32>
    %c1_64 = arith.constant 1 : index
    %c0_65 = arith.constant 0 : index
    %c0_66 = arith.constant 0 : index
    %c0_67 = arith.constant 0 : index
    %182 = vector.load %arg3[%c1_64, %c0_65, %c0_66, %c0_67] : memref<2x3x8x32xf32, #tpu.memory_space<vmem>>, vector<1x1x8x32xf32>
    %183 = vector.shape_cast %182 : vector<1x1x8x32xf32> to vector<8x32xf32>
    %cst_68 = arith.constant dense<0.000000e+00> : vector<32xf32>
    %184 = vector.multi_reduction <add>, %183, %cst_68 [0] : vector<8x32xf32> to vector<32xf32>
    %185 = vector.shape_cast %184 : vector<32xf32> to vector<1x32xf32>
    %cst_69 = arith.constant 8.000000e+00 : f32
    %186 = vector.broadcast %cst_69 : f32 to vector<1x32xf32>
    %187 = arith.divf %185, %186 : vector<1x32xf32>
    %188 = vector.broadcast %187 : vector<1x32xf32> to vector<4x32xf32>
    %189 = arith.mulf %1, %188 : vector<4x32xf32>
    %cst_70 = arith.constant dense<0.000000e+00> : vector<4xf32>
    %190 = vector.multi_reduction <add>, %189, %cst_70 [1] : vector<4x32xf32> to vector<4xf32>
    %191 = vector.shape_cast %190 : vector<4xf32> to vector<4x1xf32>
    %192 = arith.subf %191, %179 : vector<4x1xf32>
    %c3_i32_71 = arith.constant 3 : i32
    %193 = arith.muli %141, %c3_i32_71 : i32
    %c0_i32_72 = arith.constant 0 : i32
    %194 = arith.addi %193, %c0_i32_72 : i32
    %195 = arith.index_cast %194 : i32 to index
    %196 = memref.load %arg7[%195] : memref<6xf32, #tpu.memory_space<smem>>
    %197 = vector.broadcast %196 : f32 to vector<4x1xf32>
    %198 = arith.mulf %192, %197 : vector<4x1xf32>
    %199 = arith.addf %180, %198 : vector<4x1xf32>
    %c3_i32_73 = arith.constant 3 : i32
    %200 = arith.muli %141, %c3_i32_73 : i32
    %c0_i32_74 = arith.constant 0 : i32
    %201 = arith.addi %200, %c0_i32_74 : i32
    %202 = arith.index_cast %201 : i32 to index
    %203 = memref.load %arg8[%202] : memref<6xf32, #tpu.memory_space<smem>>
    %204 = vector.broadcast %203 : f32 to vector<4x1xf32>
    %205 = arith.mulf %192, %204 : vector<4x1xf32>
    %206 = arith.addf %181, %205 : vector<4x1xf32>
    %c1_75 = arith.constant 1 : index
    %c1_76 = arith.constant 1 : index
    %c0_77 = arith.constant 0 : index
    %c0_78 = arith.constant 0 : index
    %207 = vector.load %arg3[%c1_75, %c1_76, %c0_77, %c0_78] : memref<2x3x8x32xf32, #tpu.memory_space<vmem>>, vector<1x1x8x32xf32>
    %208 = vector.shape_cast %207 : vector<1x1x8x32xf32> to vector<8x32xf32>
    %cst_79 = arith.constant dense<0.000000e+00> : vector<32xf32>
    %209 = vector.multi_reduction <add>, %208, %cst_79 [0] : vector<8x32xf32> to vector<32xf32>
    %210 = vector.shape_cast %209 : vector<32xf32> to vector<1x32xf32>
    %cst_80 = arith.constant 8.000000e+00 : f32
    %211 = vector.broadcast %cst_80 : f32 to vector<1x32xf32>
    %212 = arith.divf %210, %211 : vector<1x32xf32>
    %213 = vector.broadcast %212 : vector<1x32xf32> to vector<4x32xf32>
    %214 = arith.mulf %1, %213 : vector<4x32xf32>
    %cst_81 = arith.constant dense<0.000000e+00> : vector<4xf32>
    %215 = vector.multi_reduction <add>, %214, %cst_81 [1] : vector<4x32xf32> to vector<4xf32>
    %216 = vector.shape_cast %215 : vector<4xf32> to vector<4x1xf32>
    %217 = arith.subf %216, %179 : vector<4x1xf32>
    %c3_i32_82 = arith.constant 3 : i32
    %218 = arith.muli %141, %c3_i32_82 : i32
    %c1_i32_83 = arith.constant 1 : i32
    %219 = arith.addi %218, %c1_i32_83 : i32
    %220 = arith.index_cast %219 : i32 to index
    %221 = memref.load %arg7[%220] : memref<6xf32, #tpu.memory_space<smem>>
    %222 = vector.broadcast %221 : f32 to vector<4x1xf32>
    %223 = arith.mulf %217, %222 : vector<4x1xf32>
    %224 = arith.addf %199, %223 : vector<4x1xf32>
    %c3_i32_84 = arith.constant 3 : i32
    %225 = arith.muli %141, %c3_i32_84 : i32
    %c1_i32_85 = arith.constant 1 : i32
    %226 = arith.addi %225, %c1_i32_85 : i32
    %227 = arith.index_cast %226 : i32 to index
    %228 = memref.load %arg8[%227] : memref<6xf32, #tpu.memory_space<smem>>
    %229 = vector.broadcast %228 : f32 to vector<4x1xf32>
    %230 = arith.mulf %217, %229 : vector<4x1xf32>
    %231 = arith.addf %206, %230 : vector<4x1xf32>
    %c1_86 = arith.constant 1 : index
    %c2_87 = arith.constant 2 : index
    %c0_88 = arith.constant 0 : index
    %c0_89 = arith.constant 0 : index
    %232 = vector.load %arg3[%c1_86, %c2_87, %c0_88, %c0_89] : memref<2x3x8x32xf32, #tpu.memory_space<vmem>>, vector<1x1x8x32xf32>
    %233 = vector.shape_cast %232 : vector<1x1x8x32xf32> to vector<8x32xf32>
    %cst_90 = arith.constant dense<0.000000e+00> : vector<32xf32>
    %234 = vector.multi_reduction <add>, %233, %cst_90 [0] : vector<8x32xf32> to vector<32xf32>
    %235 = vector.shape_cast %234 : vector<32xf32> to vector<1x32xf32>
    %cst_91 = arith.constant 8.000000e+00 : f32
    %236 = vector.broadcast %cst_91 : f32 to vector<1x32xf32>
    %237 = arith.divf %235, %236 : vector<1x32xf32>
    %238 = vector.broadcast %237 : vector<1x32xf32> to vector<4x32xf32>
    %239 = arith.mulf %1, %238 : vector<4x32xf32>
    %cst_92 = arith.constant dense<0.000000e+00> : vector<4xf32>
    %240 = vector.multi_reduction <add>, %239, %cst_92 [1] : vector<4x32xf32> to vector<4xf32>
    %241 = vector.shape_cast %240 : vector<4xf32> to vector<4x1xf32>
    %242 = arith.subf %241, %179 : vector<4x1xf32>
    %c3_i32_93 = arith.constant 3 : i32
    %243 = arith.muli %141, %c3_i32_93 : i32
    %c2_i32_94 = arith.constant 2 : i32
    %244 = arith.addi %243, %c2_i32_94 : i32
    %245 = arith.index_cast %244 : i32 to index
    %246 = memref.load %arg7[%245] : memref<6xf32, #tpu.memory_space<smem>>
    %247 = vector.broadcast %246 : f32 to vector<4x1xf32>
    %248 = arith.mulf %242, %247 : vector<4x1xf32>
    %249 = arith.addf %224, %248 : vector<4x1xf32>
    %c3_i32_95 = arith.constant 3 : i32
    %250 = arith.muli %141, %c3_i32_95 : i32
    %c2_i32_96 = arith.constant 2 : i32
    %251 = arith.addi %250, %c2_i32_96 : i32
    %252 = arith.index_cast %251 : i32 to index
    %253 = memref.load %arg8[%252] : memref<6xf32, #tpu.memory_space<smem>>
    %254 = vector.broadcast %253 : f32 to vector<4x1xf32>
    %255 = arith.mulf %242, %254 : vector<4x1xf32>
    %256 = arith.addf %231, %255 : vector<4x1xf32>
    %cst_97 = arith.constant dense<0.000000e+00> : vector<4xf32>
    %257 = vector.multi_reduction <add>, %139, %cst_97 [1] : vector<4x256xf32> to vector<4xf32>
    %258 = vector.shape_cast %257 : vector<4xf32> to vector<4x1xf32>
    %cst_98 = arith.constant 2.560000e+02 : f32
    %259 = vector.broadcast %cst_98 : f32 to vector<4x1xf32>
    %260 = arith.divf %258, %259 : vector<4x1xf32>
    %261 = vector.broadcast %169 : f32 to vector<4x256xf32>
    %262 = arith.mulf %164, %261 : vector<4x256xf32>
    %263 = arith.addf %179, %249 : vector<4x1xf32>
    %264 = vector.broadcast %263 : vector<4x1xf32> to vector<4x256xf32>
    %265 = arith.mulf %264, %139 : vector<4x256xf32>
    %266 = arith.addf %262, %265 : vector<4x256xf32>
    %267 = arith.subf %256, %249 : vector<4x1xf32>
    %268 = arith.mulf %260, %267 : vector<4x1xf32>
    %269 = vector.broadcast %268 : vector<4x1xf32> to vector<4x256xf32>
    %270 = arith.addf %266, %269 : vector<4x256xf32>
    %c1_99 = arith.constant 1 : index
    %c0_100 = arith.constant 0 : index
    %c0_101 = arith.constant 0 : index
    %271 = vector.load %arg9[%c1_99, %c0_100, %c0_101] : memref<2x4x256xf32, #tpu.memory_space<vmem>>, vector<1x4x256xf32>
    %272 = vector.shape_cast %271 : vector<1x4x256xf32> to vector<4x256xf32>
    %273 = vector.shape_cast %270 : vector<4x256xf32> to vector<1x4x256xf32>
    tpu.vector_store %arg9[%c1_99, %c0_100, %c0_101], %273 {strides = array<i32>} : memref<2x4x256xf32, #tpu.memory_space<vmem>>, vector<1x4x256xf32>,
    return
  }
  func.func @transform_0(%arg0: i32) -> (i32, i32, i32) {
    %c0_i32 = arith.constant 0 : i32
    %c0_i32_0 = arith.constant 0 : i32
    %c0_i32_1 = arith.constant 0 : i32
    return %arg0, %c0_i32, %c0_i32_0 : i32, i32, i32
  }
  func.func @transform_1(%arg0: i32) -> (i32, i32, i32) {
    %c0_i32 = arith.constant 0 : i32
    %c0_i32_0 = arith.constant 0 : i32
    %c0_i32_1 = arith.constant 0 : i32
    return %arg0, %c0_i32, %c0_i32_0 : i32, i32, i32
  }
  func.func @transform_2(%arg0: i32) -> (i32, i32, i32, i32) {
    %c0_i32 = arith.constant 0 : i32
    %c0_i32_0 = arith.constant 0 : i32
    %c0_i32_1 = arith.constant 0 : i32
    %c0_i32_2 = arith.constant 0 : i32
    return %arg0, %c0_i32, %c0_i32_0, %c0_i32_1 : i32, i32, i32, i32
  }
  func.func @transform_3(%arg0: i32) -> (i32, i32) {
    %c0_i32 = arith.constant 0 : i32
    %c0_i32_0 = arith.constant 0 : i32
    %c0_i32_1 = arith.constant 0 : i32
    return %c0_i32, %c0_i32_0 : i32, i32
  }
  func.func @transform_4(%arg0: i32) -> (i32, i32) {
    %c0_i32 = arith.constant 0 : i32
    %c0_i32_0 = arith.constant 0 : i32
    %c0_i32_1 = arith.constant 0 : i32
    return %c0_i32, %c0_i32_0 : i32, i32
  }
  func.func @transform_5(%arg0: i32) -> i32 {
    %c0_i32 = arith.constant 0 : i32
    %c0_i32_0 = arith.constant 0 : i32
    return %c0_i32 : i32
  }
  func.func @transform_6(%arg0: i32) -> i32 {
    %c0_i32 = arith.constant 0 : i32
    %c0_i32_0 = arith.constant 0 : i32
    return %c0_i32 : i32
  }
  func.func @transform_7(%arg0: i32) -> i32 {
    %c0_i32 = arith.constant 0 : i32
    %c0_i32_0 = arith.constant 0 : i32
    return %c0_i32 : i32
  }
  func.func @transform_8(%arg0: i32) -> (i32, i32, i32) {
    %c0_i32 = arith.constant 0 : i32
    %c0_i32_0 = arith.constant 0 : i32
    %c0_i32_1 = arith.constant 0 : i32
    return %arg0, %c0_i32, %c0_i32_0 : i32, i32, i32
  }
}

</mosaic_0001>

<bundles_post_ra>
// kernel: _denoise_impl.1
= control target key start
LH: loop header
LB: loop body
LE: loop exit
PB: predicated region body
PF: predicated region fallthrough
CT: control target
= control target key end

     0   :  { %13 = vsyncpa [#allocation3], 0  ;;  %s854_s0 = inlined_call_operand.vmem [shape: f32[2,4,256], index: 0, kind: input, shape index: {}]   ;;  %s855_s1 = inlined_call_operand.vmem [shape: f32[2,8,32], index: 1, kind: input, shape index: {}]   ;;  %s856_s2 = inlined_call_operand.vmem [shape: f32[2,3,8,32], index: 2, kind: input, shape index: {}]   ;;  %s857_s3 = inlined_call_operand.vmem [shape: f32[4,4], index: 3, kind: input, shape index: {}]   ;;  %s858_s4 = inlined_call_operand.vmem [shape: f32[4,32], index: 4, kind: input, shape index: {}]   ;;  %s859_s5 = inlined_call_operand.vmem [shape: f32[2], index: 5, kind: input, shape index: {}]   ;;  %s860_s6 = inlined_call_operand.vmem [shape: f32[6], index: 6, kind: input, shape index: {}]   ;;  %s861_s7 = inlined_call_operand.vmem [shape: f32[6], index: 7, kind: input, shape index: {}]   ;;  %s862_s8 = inlined_call_operand.vmem [shape: f32[2,4,256], index: 8, kind: output, shape index: {}]  }
   0x1   :  { %14 = vsyncpa [#allocation5], 0  ;;  %s41_s29 = sshll.u32 %s860_s6, 4  ;;  %s31_s10 = sshll.u32 %s859_s5, 4  ;;  %s42_s29 = int_to_ptr.vmem [resolvable:$true] %s41_s29  ;;  %s32_s10 = int_to_ptr.vmem [resolvable:$true] %s31_s10 }
   0x2   :  { %s548_s11 = scalar_lea.vmem %s42_s29, 16  ;;  %p553_p1 = scmp.lt.s32.totalorder %s42_s29, %s42_s29 }
   0x3   :  { %p549_p0 = scmp.ne.s32.totalorder %s42_s29, %s548_s11  ;;  %p554_p2 = scmp.lt.s32.totalorder %s548_s11, %s548_s11 }
   0x5   :  { %p555_p3 = por %p554_p2, %p553_p1 }
   0x7   :  { %p556_p4 = pnand %p555_p3, %p549_p0 }
   0x9   :  { %559 = shalt.err (!%p556_p4)
}
   0xa   :  { %s588_s12 = smov [#allocation4]   ;;  %s560_s13 = scalar_lea.vmem %s32_s10, 16 }
   0xb   :  { %44 = dma.vmem_to_smem %s42_s29, 16, %s588_s12, [#allocation5]  }
   0xc   :  { %p561_p5 = scmp.ne.s32.totalorder %s32_s10, %s560_s13  ;;  %p565_p6 = scmp.lt.s32.totalorder %s32_s10, %s32_s10 }
   0xd   :  { %p566_p7 = scmp.lt.s32.totalorder %s560_s13, %s560_s13 }
   0xf   :  { %p567_p8 = por %p566_p7, %p565_p6 }
  0x11   :  { %p568_p9 = pnand %p567_p8, %p561_p5 }
  0x13   :  { %571 = shalt.err (!%p568_p9)
}
  0x14   :  { %s589_s6 = smov [#allocation2]   ;;  %s51_s15 = sshll.u32 %s861_s7, 4  ;;  %s52_s15 = int_to_ptr.vmem [resolvable:$true] %s51_s15 }
  0x15   :  { %34 = dma.vmem_to_smem %s32_s10, 16, %s589_s6, [#allocation3]  }
  0x16   :  { %s572_s16 = scalar_lea.vmem %s52_s15, 16  ;;  %p577_p11 = scmp.lt.s32.totalorder %s52_s15, %s52_s15 }
  0x17   :  { %p573_p10 = scmp.ne.s32.totalorder %s52_s15, %s572_s16  ;;  %p578_p12 = scmp.lt.s32.totalorder %s572_s16, %s572_s16 }
  0x19   :  { %p579_p13 = por %p578_p12, %p577_p11 }
  0x1b   :  { %p580_p0 = pnand %p579_p13, %p573_p10 }
  0x1d   :  { %583 = shalt.err (!%p580_p0)
}
  0x1e   :  { %s590_s17 = smov [#allocation6]  }
  0x1f   :  { %54 = dma.vmem_to_smem %s52_s15, 16, %s590_s17, [#allocation5]  }
  0x20   :  { %584 = dma.done.wait [#allocation3], 16  }
  0x21   :  { %585 = vsyncadd [#allocation3], 4294967280 }
  0x22   :  { %586 = dma.done.wait [#allocation5], 32  }
  0x23   :  { %587 = vsyncadd [#allocation5], 4294967264 }
  0x24   :  { %64 = sfence }
  0x25   :  { %vm180_vm0 = vcmask 261120   ;;  %v507_v0 = vld [vmem:[%s856_s2 + $0x8] sm:$0xff]  ;;  %v179_v1 = vld [vmem:[%s855_s1] sm:$0xff]  ;;  %v516_v11 = vld [vmem:[%s856_s2 + $0x18] sm:$0xff]  ;;  %v591_v13 = vmov 1   ;;  %vm191_vm1 = vcmask 257024  }
  0x26   :  { %v220_v2 = vsel %vm180_vm0, %v507_v0, 0.0  ;;  %v181_v3 = vsel %vm180_vm0, %v179_v1, 0.0  ;;  %v515_v4 = vld [vmem:[%s855_s1 + $0x8] sm:$0xff]  ;;  %v195_v5 = vld [vmem:[%s856_s2] sm:$0xff]  ;;  %538 = vset.pattern.permute.xlu1 %v591_v13  ;;  %v405_v17 = vsel %vm180_vm0, %v516_v11, 0.0  ;;  %v510_v18 = vld [vmem:[%s856_s2 + $0x10] sm:$0xff] }
  0x27   :  { %v519_v6 = vld [vmem:[%s856_s2 + $0x20] sm:$0xff]  ;;  %v221_v7 = vrot.slane %v220_v2, 4  ;;  %v182_v8 = vrot.slane %v181_v3, 4  ;;  %v391_v9 = vsel %vm180_vm0, %v515_v4, 0.0  ;;  %v196_v10 = vsel %vm180_vm0, %v195_v5, 0.0  ;;  %v522_v12 = vld [vmem:[%s856_s2 + $0x28] sm:$0xff] }
  0x28   :  { %v392_v14 = vrot.slane %v391_v9, 4  ;;  %v197_v15 = vrot.slane %v196_v10, 4  ;;  %v429_v16 = vsel %vm180_vm0, %v519_v6, 0.0  ;;  %v406_v22 = vrot.slane %v405_v17, 4  ;;  %v66_v55 = vld [vmem:[%s858_s4] sm:$0xf] }
  0x29   :  { %v222_v19 = vadd.f32 %v221_v7, %v220_v2  ;;  %v183_v20 = vadd.f32 %v182_v8, %v181_v3  ;;  %v430_v21 = vrot.slane %v429_v16, 4  ;;  %v453_v25 = vsel %vm180_vm0, %v522_v12, 0.0  ;;  %s173_s4 = sld [smem:[#allocation2]]  ;;  %s514_s11 = sld [smem:[#allocation2 + $0x1]] }
  0x2a   :  { %v393_v23 = vadd.f32 %v392_v14, %v391_v9  ;;  %v198_v24 = vadd.f32 %v197_v15, %v196_v10  ;;  %v244_v26 = vsel %vm180_vm0, %v510_v18, 0.0  ;;  %v407_v30 = vadd.f32 %v406_v22, %v405_v17  ;;  %s723_s19 = sld [smem:[#allocation6 + $0x1]]  ;;  %s725_s7 = sld [smem:[#allocation4]] }
  0x2b   :  { %v223_v27 = vrot.slane %v222_v19, 2  ;;  %v184_v28 = vrot.slane %v183_v20, 2  ;;  %v431_v29 = vadd.f32 %v430_v21, %v429_v16  ;;  %v454_v33 = vrot.slane %v453_v25, 4  ;;  %s727_s20 = sld [smem:[#allocation6]]  ;;  %s729_s21 = sld [smem:[#allocation4 + $0x4]] }
  0x2c   :  { %v394_v31 = vrot.slane %v393_v23, 2  ;;  %v199_v32 = vrot.slane %v198_v24, 2  ;;  %v245_v34 = vrot.slane %v244_v26, 4  ;;  %v408_v38 = vrot.slane %v407_v30, 2  ;;  %s731_s22 = sld [smem:[#allocation6 + $0x4]]  ;;  %s737_s23 = sld [smem:[#allocation4 + $0x3]] }
  0x2d   :  { %v224_v35 = vadd.f32 %v223_v27, %v222_v19  ;;  %v185_v36 = vadd.f32 %v184_v28, %v183_v20  ;;  %v432_v37 = vrot.slane %v431_v29, 2  ;;  %v455_v41 = vadd.f32 %v454_v33, %v453_v25  ;;  %v65_v27 = vld [vmem:[%s857_s3] sm:$0xf]  ;;  %s739_s24 = sld [smem:[#allocation6 + $0x3]]  ;;  %s741_s25 = sld [smem:[#allocation4 + $0x5]] }
  0x2e   :  { %v395_v39 = vadd.f32 %v394_v31, %v393_v23  ;;  %v200_v40 = vadd.f32 %v199_v32, %v198_v24  ;;  %v246_v42 = vadd.f32 %v245_v34, %v244_v26  ;;  %v409_v46 = vadd.f32 %v408_v38, %v407_v30  ;;  %v698_v34 = vld [vmem:[%s854_s0] sm:$0xff]  ;;  %s743_s26 = sld [smem:[#allocation6 + $0x5]]  ;;  %s745_s27 = sld [smem:[#allocation4 + $0x2]] }
  0x2f   :  { %v225_v43 = vrot.slane %v224_v35, 1  ;;  %v186_v44 = vrot.slane %v185_v36, 1  ;;  %v433_v45 = vadd.f32 %v432_v37, %v431_v29  ;;  %v456_v49 = vrot.slane %v455_v41, 2  ;;  %s174_s12 = smul.f32 %s173_s4, %s173_s4  ;;  %s747_s28 = sld [smem:[#allocation6 + $0x2]] }
  0x30   :  { %v396_v47 = vrot.slane %v395_v39, 1  ;;  %v201_v48 = vrot.slane %v200_v40, 1  ;;  %v247_v50 = vrot.slane %v246_v42, 2  ;;  %v410_v54 = vrot.slane %v409_v46, 1  ;;  %s384_s5 = smul.f32 %s514_s11, %s514_s11 }
  0x31   :  { %v226_v51 = vadd.f32 %v225_v43, %v224_v35  ;;  %v187_v52 = vadd.f32 %v186_v44, %v185_v36  ;;  %v434_v53 = vrot.slane %v433_v45, 1  ;;  %v457_v58 = vadd.f32 %v456_v49, %v455_v41  ;;  %s175_s14 = sadd.f32 1.0, %s174_s12  ;;  %v703_v35 = vld [vmem:[%s854_s0 + $0x8] sm:$0xff]  ;;  %s721_s0 = sld [smem:[#allocation4 + $0x1]] }
  0x32   :  { %v397_v56 = vadd.f32 %v396_v47, %v395_v39  ;;  %v202_v57 = vadd.f32 %v201_v48, %v200_v40  ;;  %v248_v59 = vadd.f32 %v247_v50, %v246_v42  ;;  %v411_v63 = vadd.f32 %v410_v54, %v409_v46  ;;  %s385_s15 = sadd.f32 1.0, %s384_s5 }
  0x33   :  { %v227_v60 = vmul.f32 0.125, %v226_v51  ;;  %v189_v61 = vmul.f32 0.125, %v187_v52  ;;  %v435_v62 = vadd.f32 %v434_v53, %v433_v45  ;;  %v458_v2 = vrot.slane %v457_v58, 1 }
  0x34   :  { %v398_v0 = vmul.f32 0.125, %v397_v56  ;;  %v203_v1 = vmul.f32 0.125, %v202_v57  ;;  %v249_v3 = vrot.slane %v248_v59, 1  ;;  %v412_v7 = vmul.f32 0.125, %v411_v63 }
  0x35   :  { %v228_v4 = vmul.f32 %v227_v60, %v66_v55  ;;  %v190_v5 = vmul.f32 %v189_v61, %v66_v55  ;;  %v436_v6 = vmul.f32 0.125, %v435_v62  ;;  %v459_v10 = vadd.f32 %v458_v2, %v457_v58 }
  0x36   :  { %v399_v8 = vmul.f32 %v398_v0, %v66_v55  ;;  %v204_v9 = vmul.f32 %v203_v1, %v66_v55  ;;  %v250_v11 = vadd.f32 %v249_v3, %v248_v59  ;;  %v413_v16 = vmul.f32 %v412_v7, %v66_v55 }
  0x37   :  { %v229_v12 = vsel %vm191_vm1, %v228_v4, 0.0  ;;  %v192_v13 = vsel %vm191_vm1, %v190_v5, 0.0  ;;  %v437_v15 = vmul.f32 %v436_v6, %v66_v55  ;;  %v460_v18 = vmul.f32 0.125, %v459_v10 }
  0x38   :  { %230 = vadd.xlane.f32.xlu1 %v229_v12  ;;  %193 = vadd.xlane.f32.xlu0 %v192_v13  ;;  %v400_v14 = vsel %vm191_vm1, %v399_v8, 0.0  ;;  %v205_v17 = vsel %vm191_vm1, %v204_v9, 0.0  ;;  %v251_v19 = vmul.f32 0.125, %v250_v11  ;;  %v592_v20 = vmov 0  }
  0x39   :  { %537 = vset.pattern.permute.xlu0 %v592_v20  ;;  %v438_v21 = vsel %vm191_vm1, %v437_v15, 0.0  ;;  %v414_v22 = vsel %vm191_vm1, %v413_v16, 0.0  ;;  %v461_v23 = vmul.f32 %v460_v18, %v66_v55  ;;  %v176_v28 = vstv %s175_s14 }
  0x3a   :  { %v252_v24 = vmul.f32 %v251_v19, %v66_v55  ;;  %v386_v29 = vstv %s385_s15  ;;  %544 = vrcp.f32 %v176_v28  ;;  %v593_v30 = vmov 2  }
  0x3b   :  { %v462_v25 = vsel %vm191_vm1, %v461_v23, 0.0  ;;  %546 = vrcp.f32 %v386_v29  ;;  %v594_v31 = vmov 3   ;;  %v707_v36 = vcombine.high %v698_v34, %v698_v34 }
  0x3c   :  { %401 = vadd.xlane.f32.xlu1 %v400_v14  ;;  %206 = vadd.xlane.f32.xlu0 %v205_v17  ;;  %v253_v26 = vsel %vm191_vm1, %v252_v24, 0.0  ;;  %v711_v37 = vcombine.high %v703_v35, %v703_v35  ;;  %vm268_vm2 = vcmask 1043456   ;;  %v75_v46 = vlaneseq }
  0x3d   :  { %v269_v38 = vsel %vm268_vm2, %v698_v34, 0.0  ;;  %v270_v39 = vsel %vm268_vm2, %v707_v36, 0.0  ;;  %v477_v40 = vsel %vm268_vm2, %v703_v35, 0.0  ;;  %v235_v52 = vstv %s721_s0 }
  0x3e   :  { %v478_v41 = vsel %vm268_vm2, %v711_v37, 0.0  ;;  %v271_v42 = vadd.f32 %v270_v39, %v269_v38  ;;  %v735_v48 = vshrl.u32 %v75_v46, 7  ;;  %v239_v53 = vstv %s723_s19 }
  0x3f   :  { %v479_v43 = vadd.f32 %v478_v41, %v477_v40  ;;  %v211_v57 = vstv %s725_s7  ;;  %v215_v58 = vstv %s727_s20  ;;  %v444_v59 = vstv %s729_s21 }
  0x40   :  { %439 = vadd.xlane.f32.xlu1 %v438_v21  ;;  %415 = vadd.xlane.f32.xlu0 %v414_v22  ;;  %v750_v50 = vsub.s32 1, %v735_v48  ;;  %v105_v51 = vsub.s32 5, %v735_v48  ;;  %v756_v55 = vsub.s32 0, %v735_v48  ;;  %v81_v56 = vsub.s32 4, %v735_v48 }
  0x41   :  { %v448_v60 = vstv %s731_s22  ;;  %v769_v0 = vsub.s32 2, %v735_v48  ;;  %v131_v1 = vsub.s32 6, %v735_v48  ;;  %v420_v2 = vstv %s737_s23 }
  0x42   :  { %v102_v62 = vrot.slane %v698_v34, %v750_v50  ;;  %v766_v63 = vrot.slane %v698_v34, %v105_v51  ;;  %v424_v3 = vstv %s739_s24  ;;  %v320_v4 = vrot.slane %v703_v35, %v750_v50 }
  0x43   :  { %v777_v5 = vrot.slane %v703_v35, %v105_v51  ;;  %v468_v6 = vstv %s741_s25  ;;  %v78_v7 = vrot.slane %v698_v34, %v756_v55  ;;  %v82_v8 = vrot.slane %v698_v34, %v81_v56 }
  0x44   :  { %463 = vadd.xlane.f32.xlu1 %v462_v25  ;;  %254 = vadd.xlane.f32.xlu0 %v253_v26  ;;  %v545_v32 = vpop.eup %544  ;;  %v300_v9 = vrot.slane %v703_v35, %v756_v55  ;;  %v472_v10 = vstv %s743_s26  ;;  %v259_v11 = vstv %s745_s27  ;;  %v263_v12 = vstv %s747_s28 }
  0x45   :  { %526 = vpush %v545_v32  ;;  %v547_v33 = vpop.eup %546  ;;  %v304_v13 = vrot.slane %v703_v35, %v81_v56  ;;  %v112_v15 = vrot.slane %v102_v62, %v750_v50  ;;  %v116_v16 = vrot.slane %v766_v63, %v750_v50  ;;  %v128_v17 = vrot.slane %v698_v34, %v769_v0 }
  0x46   :  { %528 = vpush %v547_v33  ;;  %v795_v18 = vrot.slane %v698_v34, %v131_v1  ;;  %v330_v19 = vrot.slane %v320_v4, %v750_v50  ;;  %v334_v20 = vrot.slane %v777_v5, %v750_v50  ;;  %v801_v21 = vsub.s32 3, %v735_v48 }
  0x47   :  { %v157_v22 = vsub.s32 7, %v735_v48  ;;  %v88_v25 = vrot.slane %v78_v7, %v756_v55  ;;  %v92_v26 = vrot.slane %v82_v8, %v756_v55  ;;  %v138_v33 = vrot.slane %v128_v17, %v769_v0 }
  0x48   :  { %v142_v38 = vrot.slane %v795_v18, %v769_v0  ;;  %v346_v39 = vrot.slane %v703_v35, %v131_v1 }
  0x49   :  { %v368_v50 = vrot.slane %v703_v35, %v157_v22 }
  0x4a   :  { %v356_v1 = vrot.slane %v346_v39, %v769_v0 }
  0x55   :  { %96 = vperm.xlu1 %538, %v65_v27  }
  0x59   :  { %539 = vset.pattern.permute.xlu1 %v593_v30  ;;  %v314_v30 = vrot.slane %v304_v13, %v756_v55 }
  0x5a   :  { %71 = vperm.xlu0 %537, %v65_v27  }
  0x5e   :  { %541 = vset.pattern.permute.xlu0 %v594_v31 }
  0x76   :  { %s836_s29 = spop %526 }
  0x77   :  { %s838_s1 = spop %528 }
  0x79   :  { %272 = vadd.xlane.f32.xlu1 %v271_v42  ;;  %480 = vadd.xlane.f32.xlu0 %v479_v43  ;;  %v154_v42 = vrot.slane %v698_v34, %v801_v21  ;;  %v824_v43 = vrot.slane %v698_v34, %v157_v22 }
  0x8a   :  { %122 = vperm.xlu1 %539, %v65_v27  }
  0x8e   :  { %540 = vset.pattern.permute.xlu1 %v594_v31  ;;  %v342_v31 = vrot.slane %v703_v35, %v769_v0 }
  0x8f   :  { %148 = vperm.xlu1 %540, %v65_v27   ;;  %v310_v27 = vrot.slane %v300_v9, %v756_v55  ;;  %v164_v9 = vrot.slane %v154_v42, %v801_v21 }
  0x90   :  { %v352_v63 = vrot.slane %v342_v31, %v769_v0 }
  0xc5   :  { %v717_v44 = vpop.xlane.xlu1 %230  ;;  %v719_v45 = vpop.xlane.xlu0 %193 }
  0xc6   :  { %v232_v32 = vsub.f32 %v717_v44, %v719_v45 }
  0xc8   :  { %v240_v62 = vmul.f32 %v239_v53, %v232_v32 }
  0xc9   :  { %v733_v47 = vpop.xlane.xlu1 %401  ;;  %v207_v49 = vpop.xlane.xlu0 %206 }
  0xca   :  { %v208_v23 = vsub.f32 %v207_v49, %v719_v45  ;;  %v364_v49 = vrot.slane %v703_v35, %v801_v21 }
  0xcc   :  { %v212_v46 = vmul.f32 %v211_v57, %v208_v23  ;;  %v216_v48 = vmul.f32 %v215_v58, %v208_v23 }
  0xcd   :  { %v440_v54 = vpop.xlane.xlu1 %439  ;;  %v416_v61 = vpop.xlane.xlu0 %415 }
  0xce   :  { %v441_v28 = vsub.f32 %v440_v54, %v733_v47  ;;  %v417_v29 = vsub.f32 %v416_v61, %v733_v47  ;;  %v236_v61 = vmul.f32 %v235_v52, %v232_v32  ;;  %v378_v52 = vrot.slane %v368_v50, %v801_v21 }
  0xd0   :  { %v445_v51 = vmul.f32 %v444_v59, %v441_v28  ;;  %v449_v54 = vmul.f32 %v448_v60, %v441_v28  ;;  %v421_v55 = vmul.f32 %v420_v2, %v417_v29  ;;  %v425_v56 = vmul.f32 %v424_v3, %v417_v29 }
  0xd1   :  { %v464_v14 = vpop.xlane.xlu1 %463  ;;  %v255_v24 = vpop.xlane.xlu0 %254  ;;  %v168_v59 = vrot.slane %v824_v43, %v801_v21  ;;  %v374_v60 = vrot.slane %v364_v49, %v801_v21  ;;  %v237_v53 = vadd.f32 %v236_v61, %v212_v46  ;;  %v241_v2 = vadd.f32 %v240_v62, %v216_v48 }
  0xd2   :  { %v465_v40 = vsub.f32 %v464_v14, %v733_v47  ;;  %v256_v41 = vsub.f32 %v255_v24, %v719_v45  ;;  %v446_v3 = vadd.f32 %v445_v51, %v421_v55  ;;  %v450_v13 = vadd.f32 %v449_v54, %v425_v56 }
  0xd4   :  { %v469_v4 = vmul.f32 %v468_v6, %v465_v40  ;;  %v473_v5 = vmul.f32 %v472_v10, %v465_v40  ;;  %v260_v57 = vmul.f32 %v259_v11, %v256_v41  ;;  %v264_v58 = vmul.f32 %v263_v12, %v256_v41 }
  0xd5   :  { %v97_v44 = vpop.permute.xlu1 %96  ;;  %v276_v41 = vstv %s836_s29 }
  0xd6   :  { %v470_v12 = vadd.f32 %v469_v4, %v446_v3  ;;  %v474_v14 = vadd.f32 %v473_v5, %v450_v13  ;;  %v261_v17 = vadd.f32 %v260_v57, %v237_v53  ;;  %v265_v18 = vadd.f32 %v264_v58, %v241_v2 }
  0xd7   :  { %v117_v22 = vmul.f32 %v112_v15, %v97_v44  ;;  %v118_v23 = vmul.f32 %v116_v16, %v97_v44  ;;  %v335_v24 = vmul.f32 %v330_v19, %v97_v44  ;;  %v336_v28 = vmul.f32 %v334_v20, %v97_v44 }
  0xd8   :  { %v486_v40 = vadd.f32 %v470_v12, %v733_v47  ;;  %v279_v15 = vadd.f32 %v261_v17, %v719_v45  ;;  %v483_v19 = vstv %s838_s1  ;;  %v284_v50 = vsub.f32 %v265_v18, %v261_v17 }
  0xd9   :  { %v72_v7 = vpop.permute.xlu0 %71  ;;  %v491_v54 = vsub.f32 %v474_v14, %v470_v12 }
  0xda   :  { %v93_v0 = vmul.f32 %v88_v25, %v72_v7  ;;  %v94_v6 = vmul.f32 %v92_v26, %v72_v7  ;;  %v315_v10 = vmul.f32 %v310_v27, %v72_v7  ;;  %v316_v11 = vmul.f32 %v314_v30, %v72_v7 }
  0xdb   :  { %v280_v62 = vmul.f32 %v279_v15, %v698_v34  ;;  %v488_v4 = vmul.f32 %v486_v40, %v711_v37 }
  0xdc   :  { %v119_v30 = vadd.f32 %v117_v22, %v93_v0  ;;  %v120_v31 = vadd.f32 %v118_v23, %v94_v6  ;;  %v337_v32 = vadd.f32 %v335_v24, %v315_v10  ;;  %v338_v39 = vadd.f32 %v336_v28, %v316_v11 }
 0x106   :  { %v273_v8 = vpop.xlane.xlu1 %272  ;;  %v481_v16 = vpop.xlane.xlu0 %480 }
 0x107   :  { %v275_v51 = vmul.f32 0.00390625, %v273_v8  ;;  %v482_v55 = vmul.f32 0.00390625, %v481_v16 }
 0x109   :  { %v492_v8 = vmul.f32 %v491_v54, %v482_v55 }
 0x10a   :  { %v123_v21 = vpop.permute.xlu1 %122 }
 0x10b   :  { %v143_v29 = vmul.f32 %v138_v33, %v123_v21  ;;  %v144_v25 = vmul.f32 %v142_v38, %v123_v21  ;;  %v357_v26 = vmul.f32 %v352_v63, %v123_v21  ;;  %v358_v27 = vmul.f32 %v356_v1, %v123_v21 }
 0x10c   :  { %v281_v63 = vmul.f32 %v279_v15, %v707_v36  ;;  %v487_v1 = vmul.f32 %v703_v35, %v486_v40 }
 0x10d   :  { %v145_v42 = vadd.f32 %v143_v29, %v119_v30  ;;  %v146_v43 = vadd.f32 %v144_v25, %v120_v31  ;;  %v359_v46 = vadd.f32 %v357_v26, %v337_v32  ;;  %v360_v48 = vadd.f32 %v358_v27, %v338_v39 }
 0x10e   :  { %v149_v20 = vpop.permute.xlu1 %148 }
 0x10f   :  { %v169_v33 = vmul.f32 %v164_v9, %v149_v20  ;;  %v170_v38 = vmul.f32 %v168_v59, %v149_v20  ;;  %v379_v44 = vmul.f32 %v374_v60, %v149_v20  ;;  %v380_v49 = vmul.f32 %v378_v52, %v149_v20 }
 0x110   :  { %v285_v9 = vmul.f32 %v284_v50, %v275_v51 }
 0x111   :  { %v171_v56 = vadd.f32 %v169_v33, %v145_v42  ;;  %v172_v47 = vadd.f32 %v170_v38, %v146_v43  ;;  %v381_v61 = vadd.f32 %v379_v44, %v359_v46  ;;  %v382_v45 = vadd.f32 %v380_v49, %v360_v48 }
 0x113   :  { %v277_v5 = vmul.f32 %v276_v41, %v171_v56  ;;  %v278_v57 = vmul.f32 %v276_v41, %v172_v47  ;;  %v484_v58 = vmul.f32 %v483_v19, %v381_v61  ;;  %v485_v7 = vmul.f32 %v483_v19, %v382_v45 }
 0x115   :  { %v282_v59 = vadd.f32 %v280_v62, %v277_v5  ;;  %v283_v60 = vadd.f32 %v281_v63, %v278_v57  ;;  %v489_v52 = vadd.f32 %v487_v1, %v484_v58  ;;  %v490_v53 = vadd.f32 %v488_v4, %v485_v7 }
 0x117   :  { %v286_v2 = vadd.f32 %v285_v9, %v282_v59  ;;  %v287_v3 = vadd.f32 %v285_v9, %v283_v60  ;;  %v493_v13 = vadd.f32 %v492_v8, %v489_v52  ;;  %v494_v34 = vadd.f32 %v492_v8, %v490_v53 }
 0x119   :  { %v290_v0 = vcombine.low %v286_v2, %v287_v3  ;;  %v497_v36 = vcombine.low %v493_v13, %v494_v34 }
 0x11b   :  { %292 = vst [vmem:[%s862_s8] sm:$0xff] %v290_v0  ;;  %525 = vst [vmem:[%s862_s8 + $0x8] sm:$0xff] %v497_v36 }
 0x11c   :  { %505 = vsyncpa [#allocation3], 1 }
 0x11d   :  { %506 = vsyncpa [#allocation5], 1 }

</bundles_post_ra>
